<compile_context>
chip_gen: v6e
topology: v6e:2x2x1
jax: 0.10.0
libtpu: 0.0.40
codegen_flags: <defaults>
</compile_context>

<pallas_src>
import math

import jax
import jax.numpy as jnp
from jax import lax
from jax.experimental import pallas as pl
from jax.experimental.pallas import tpu as pltpu


HIDDEN = 32


def _round_up(v, m):
    return ((v + m - 1) // m) * m


def _make_net_sir_kernel(tile, chunk, unroll):
    """Build a kernel specialized for a given lane tile / inner chunk size."""
    n_chunks = tile // chunk

    def kernel(x_ref,
               w1_ref, b1_ref,
               w2_ref, b2_ref,
               w3_ref, b3_ref,
               w4_ref, b4_ref,
               w5_ref, b5_ref,
               ic_ref):
        # Hidden-layer activation dtype (f32, or bf16 on the optional fast
        # path); inferred from the hidden weight dtype.
        act_dt = w2_ref.dtype

        # Hoist all parameter loads out of the chunk loop (tiny, VMEM-resident).
        w1 = w1_ref[...]; b1 = b1_ref[...]
        w2 = w2_ref[...]; b2 = b2_ref[...]
        w3 = w3_ref[...]; b3 = b3_ref[...]
        w4 = w4_ref[...]; b4 = b4_ref[...]
        w5 = w5_ref[...]; b5 = b5_ref[...]

        def body(c, carry):
            off = c * chunk
            if not isinstance(off, int):
                off = pl.multiple_of(off, chunk)
            x = x_ref[:, pl.ds(off, chunk)]                     # (1, chunk)

            # Layer 1 (in_features = 1): VPU broadcast outer product, no MXU.
            h = jnp.tanh((w1 * x + b1).astype(act_dt))          # (32, chunk)

            # Hidden layers: (32,32) @ (32,chunk) on the MXU, f32 accumulate.
            for w, b in ((w2, b2), (w3, b3), (w4, b4)):
                z = jnp.dot(w, h, preferred_element_type=jnp.float32) + b
                h = jnp.tanh(z.astype(act_dt))                  # (32, chunk)

            # Layer 5 (out_features = 1): VPU mul + sublane reduce, f32.
            hf = h.astype(jnp.float32)
            z = jnp.sum(hf * w5, axis=0, keepdims=True) + b5    # (1, chunk)

            # sigmoid(z) == 0.5 * (tanh(z/2) + 1): exact, single EUP op.
            ic_ref[:, pl.ds(off, chunk)] = 0.5 * (jnp.tanh(0.5 * z) + 1.0)
            return carry

        if n_chunks == 1:
            body(0, 0)
        else:
            # Inner chunked loop keeps the (32, chunk) activation chain in
            # vregs between layers (avoids whole-tile VMEM round-trips).
            lax.fori_loop(0, n_chunks, body, 0,
                          unroll=max(1, min(unroll, n_chunks)))

    return kernel


def init_params(key):
    """PyTorch-style Linear init, PyTorch layout: W (out, in), b (out,)."""
    dims = [(1, HIDDEN), (HIDDEN, HIDDEN), (HIDDEN, HIDDEN),
            (HIDDEN, HIDDEN), (HIDDEN, 1)]
    params = []
    for fan_in, fan_out in dims:
        key, kw, kb = jax.random.split(key, 3)
        bound = 1.0 / math.sqrt(fan_in)
        w = jax.random.uniform(kw, (fan_out, fan_in), jnp.float32, -bound, bound)
        b = jax.random.uniform(kb, (fan_out,), jnp.float32, -bound, bound)
        params.append((w, b))
    return params


def net_sir_reference(x, params):
    """Pure-JAX reference of the PyTorch forward (PyTorch parameter layout)."""
    h = x                                # (N, 1)
    for i, (w, b) in enumerate(params):
        h = h @ w.T + b
        h = jnp.tanh(h) if i < len(params) - 1 else jax.nn.sigmoid(h)
    ic = h[:, 0]
    inew = ic[1:] - ic[:-1]
    return ic, inew


def net_sir_forward(x, params, *, n_tile=8192, chunk=256, unroll=4,
                    min_pallas_n=512, bf16_act=False):
    """x: (N, 1) float32  ->  (Ic: (N,), Inew: (N-1,))"""
    n = x.shape[0]

    # Tiny inputs: pallas_call launch + DMA setup dominates -> plain XLA path.
    if n < min_pallas_n:
        return net_sir_reference(x, params)

    chunk = max(128, _round_up(chunk, 128))
    # Lane tile: as large as n_tile (amortizes ~0.35 us/step overhead), but no
    # larger than ceil(N/2) rounded to the chunk, so the "parallel" grid axis
    # has >= 2 steps and both v7x TensorCores get work.
    tile = min(_round_up(n_tile, chunk),
               max(chunk, _round_up(-(-n // 2), chunk)))
    n_pad = _round_up(n, tile)

    # Lane-major layout; zero padding only feeds a bias-only tanh chain whose
    # (finite) outputs are discarded below.
    x_lane = jnp.pad(x.reshape(1, n), ((0, 0), (0, n_pad - n)))   # (1, n_pad)

    (w1, b1), (w2, b2), (w3, b3), (w4, b4), (w5, b5) = params
    # Optional bf16 hidden path (v6e/v7x EUP/VPU bf16, MXU bf16 ingest);
    # accumulation + final sigmoid stay f32.
    hdt = jnp.bfloat16 if bf16_act else jnp.float32
    # Kernel-layout parameters:
    #   layer 1: W (32, 1), b (32, 1)   -- VPU broadcast
    #   hidden : W (32, 32), b (32, 1)  -- W @ h on the MXU
    #   layer 5: W^T (32, 1), b (1, 1)  -- VPU mul + sublane reduce
    flat = [x_lane,
            w1, b1.reshape(HIDDEN, 1),
            w2.astype(hdt), b2.reshape(HIDDEN, 1),
            w3.astype(hdt), b3.reshape(HIDDEN, 1),
            w4.astype(hdt), b4.reshape(HIDDEN, 1),
            w5.T, b5.reshape(1, 1)]

    def resident_spec(arr):
        # Constant block index -> fetched once, VMEM-resident across the grid.
        return pl.BlockSpec(arr.shape, lambda i: (0, 0))

    kernel = _make_net_sir_kernel(tile, chunk, unroll)

    ic_lane = pl.pallas_call(
        kernel,
        out_shape=jax.ShapeDtypeStruct((1, n_pad), jnp.float32),
        grid_spec=pltpu.PrefetchScalarGridSpec(
            num_scalar_prefetch=0,
            grid=(n_pad // tile,),
            in_specs=[pl.BlockSpec((1, tile), lambda i: (0, i))]
                     + [resident_spec(a) for a in flat[1:]],
            out_specs=pl.BlockSpec((1, tile), lambda i: (0, i)),
        ),
        # Per-step VMEM is tiny (double-buffered (1,tile) x/Ic + ~5 KiB of
        # weights), so the default scoped VMEM limit is fine on all chips
        # including v7x.  TODO(synk): evaluate pltpu.CORE_PARALLEL here.
        compiler_params=pltpu.CompilerParams(
            dimension_semantics=("parallel",)),
    )(*flat)

    ic = ic_lane[0, :n]                  # (N,)   drop lane padding
    inew = ic[1:] - ic[:-1]              # (N-1,) finite difference in wrapper
    return ic, inew


if __name__ == "__main__":
    key = jax.random.PRNGKey(0)
    params = init_params(key)

    # 1) Tiny N (N=8): pure-JAX fast path (launch overhead would dominate).
    x_small = jnp.linspace(0.0, 1.0, 8).reshape(8, 1).astype(jnp.float32)
    ic_s, inew_s = net_sir_forward(x_small, params)
    jax.block_until_ready((ic_s, inew_s))
    ic_s_ref, inew_s_ref = net_sir_reference(x_small, params)
    assert ic_s.shape == (8,) and inew_s.shape == (7,)
    assert jnp.allclose(ic_s, ic_s_ref, atol=1e-5, rtol=1e-4)
    assert jnp.allclose(inew_s, inew_s_ref, atol=1e-5, rtol=1e-4)

    # 2) Pallas path, multi-step grid at a small shape (2 steps x 1 chunk).
    N1 = 300
    key, k1 = jax.random.split(key)
    x1 = jax.random.uniform(k1, (N1, 1), jnp.float32)
    ic1, inew1 = net_sir_forward(x1, params, min_pallas_n=0)
    jax.block_until_ready((ic1, inew1))
    ic1_ref, inew1_ref = net_sir_reference(x1, params)
    assert ic1.shape == (N1,) and inew1.shape == (N1 - 1,)
    assert jnp.allclose(ic1, ic1_ref, atol=1e-5, rtol=1e-4)
    assert jnp.allclose(inew1, inew1_ref, atol=1e-5, rtol=1e-4)

    # 3) Pallas path with the chunked inner loop (2 steps x 8 chunks, unroll=4).
    N2 = 4096
    key, k2 = jax.random.split(key)
    x2 = jax.random.uniform(k2, (N2, 1), jnp.float32)
    ic2, inew2 = net_sir_forward(x2, params)
    jax.block_until_ready((ic2, inew2))
    ic2_ref, inew2_ref = net_sir_reference(x2, params)
    assert ic2.shape == (N2,) and inew2.shape == (N2 - 1,)
    assert jnp.allclose(ic2, ic2_ref, atol=1e-5, rtol=1e-4)
    assert jnp.allclose(inew2, inew2_ref, atol=1e-5, rtol=1e-4)

    # 4) Optional bf16 activation path (v6e/v7x only; looser tolerance).
    kind = jax.devices()[0].device_kind.lower()
    if ("v6" in kind) or ("v7" in kind):
        ic3, inew3 = net_sir_forward(x2, params, bf16_act=True)
        jax.block_until_ready((ic3, inew3))
        assert jnp.allclose(ic3, ic2_ref, atol=3e-2, rtol=3e-2)
        assert jnp.allclose(inew3, inew2_ref, atol=3e-2, rtol=3e-2)

    print("KERNEL_OK")
</pallas_src>

<mosaic_0001>
module attributes {stable_mosaic.version = 11 : i64} {
  func.func @kernel(%arg0: i32, %arg1: memref<1x256xf32, #tpu.memory_space<vmem>>, %arg2: memref<32x1xf32, #tpu.memory_space<vmem>>, %arg3: memref<32x1xf32, #tpu.memory_space<vmem>>, %arg4: memref<32x32xf32, #tpu.memory_space<vmem>>, %arg5: memref<32x1xf32, #tpu.memory_space<vmem>>, %arg6: memref<32x32xf32, #tpu.memory_space<vmem>>, %arg7: memref<32x1xf32, #tpu.memory_space<vmem>>, %arg8: memref<32x32xf32, #tpu.memory_space<vmem>>, %arg9: memref<32x1xf32, #tpu.memory_space<vmem>>, %arg10: memref<32x1xf32, #tpu.memory_space<vmem>>, %arg11: memref<1x1xf32, #tpu.memory_space<vmem>>, %arg12: memref<1x256xf32, #tpu.memory_space<vmem>>) attributes {dimension_semantics = [#tpu.dimension_semantics<parallel>], iteration_bounds = array<i64: 2>, scalar_prefetch = 0 : i64, scratch_operands = 0 : i64, tpu.core_type = #tpu.core_type<tc>, window_params = [{transform_indices = @transform_0, window_bounds = array<i64: 1, 256>}, {pipeline_mode = #tpu.pipeline_mode<synchronous>, transform_indices = @transform_1, window_bounds = array<i64: 32, 1>}, {pipeline_mode = #tpu.pipeline_mode<synchronous>, transform_indices = @transform_2, window_bounds = array<i64: 32, 1>}, {pipeline_mode = #tpu.pipeline_mode<synchronous>, transform_indices = @transform_3, window_bounds = array<i64: 32, 32>}, {pipeline_mode = #tpu.pipeline_mode<synchronous>, transform_indices = @transform_4, window_bounds = array<i64: 32, 1>}, {pipeline_mode = #tpu.pipeline_mode<synchronous>, transform_indices = @transform_5, window_bounds = array<i64: 32, 32>}, {pipeline_mode = #tpu.pipeline_mode<synchronous>, transform_indices = @transform_6, window_bounds = array<i64: 32, 1>}, {pipeline_mode = #tpu.pipeline_mode<synchronous>, transform_indices = @transform_7, window_bounds = array<i64: 32, 32>}, {pipeline_mode = #tpu.pipeline_mode<synchronous>, transform_indices = @transform_8, window_bounds = array<i64: 32, 1>}, {pipeline_mode = #tpu.pipeline_mode<synchronous>, transform_indices = @transform_9, window_bounds = array<i64: 32, 1>}, {pipeline_mode = #tpu.pipeline_mode<synchronous>, transform_indices = @transform_10, window_bounds = array<i64: 1, 1>}, {transform_indices = @transform_11, window_bounds = array<i64: 1, 256>}]} {
    %c0 = arith.constant 0 : index
    %c0_0 = arith.constant 0 : index
    %0 = vector.load %arg2[%c0, %c0_0] : memref<32x1xf32, #tpu.memory_space<vmem>>, vector<32x1xf32>
    %c0_1 = arith.constant 0 : index
    %c0_2 = arith.constant 0 : index
    %1 = vector.load %arg3[%c0_1, %c0_2] : memref<32x1xf32, #tpu.memory_space<vmem>>, vector<32x1xf32>
    %c0_3 = arith.constant 0 : index
    %c0_4 = arith.constant 0 : index
    %2 = vector.load %arg4[%c0_3, %c0_4] : memref<32x32xf32, #tpu.memory_space<vmem>>, vector<32x32xf32>
    %c0_5 = arith.constant 0 : index
    %c0_6 = arith.constant 0 : index
    %3 = vector.load %arg5[%c0_5, %c0_6] : memref<32x1xf32, #tpu.memory_space<vmem>>, vector<32x1xf32>
    %c0_7 = arith.constant 0 : index
    %c0_8 = arith.constant 0 : index
    %4 = vector.load %arg6[%c0_7, %c0_8] : memref<32x32xf32, #tpu.memory_space<vmem>>, vector<32x32xf32>
    %c0_9 = arith.constant 0 : index
    %c0_10 = arith.constant 0 : index
    %5 = vector.load %arg7[%c0_9, %c0_10] : memref<32x1xf32, #tpu.memory_space<vmem>>, vector<32x1xf32>
    %c0_11 = arith.constant 0 : index
    %c0_12 = arith.constant 0 : index
    %6 = vector.load %arg8[%c0_11, %c0_12] : memref<32x32xf32, #tpu.memory_space<vmem>>, vector<32x32xf32>
    %c0_13 = arith.constant 0 : index
    %c0_14 = arith.constant 0 : index
    %7 = vector.load %arg9[%c0_13, %c0_14] : memref<32x1xf32, #tpu.memory_space<vmem>>, vector<32x1xf32>
    %c0_15 = arith.constant 0 : index
    %c0_16 = arith.constant 0 : index
    %8 = vector.load %arg10[%c0_15, %c0_16] : memref<32x1xf32, #tpu.memory_space<vmem>>, vector<32x1xf32>
    %c0_17 = arith.constant 0 : index
    %c0_18 = arith.constant 0 : index
    %9 = vector.load %arg11[%c0_17, %c0_18] : memref<1x1xf32, #tpu.memory_space<vmem>>, vector<1x1xf32>
    %c0_19 = arith.constant 0 : index
    %c0_20 = arith.constant 0 : index
    %10 = vector.load %arg1[%c0_19, %c0_20] : memref<1x256xf32, #tpu.memory_space<vmem>>, vector<1x256xf32>
    %11 = vector.broadcast %0 : vector<32x1xf32> to vector<32x256xf32>
    %12 = vector.broadcast %10 : vector<1x256xf32> to vector<32x256xf32>
    %13 = arith.mulf %11, %12 : vector<32x256xf32>
    %14 = vector.broadcast %1 : vector<32x1xf32> to vector<32x256xf32>
    %15 = arith.addf %13, %14 : vector<32x256xf32>
    %16 = math.tanh %15 : vector<32x256xf32>
    %cst = arith.constant dense<0.000000e+00> : vector<32x256xf32>
    %17 = tpu.matmul %2, %16, %cst {dimension_numbers = #tpu.dot_dimension_numbers<[1], [0], [0], [1], [0, 0, 1, 1], [], []>} : vector<32x32xf32>, vector<32x256xf32>, vector<32x256xf32> -> vector<32x256xf32>
    %18 = vector.broadcast %3 : vector<32x1xf32> to vector<32x256xf32>
    %19 = arith.addf %17, %18 : vector<32x256xf32>
    %20 = math.tanh %19 : vector<32x256xf32>
    %cst_21 = arith.constant dense<0.000000e+00> : vector<32x256xf32>
    %21 = tpu.matmul %4, %20, %cst_21 {dimension_numbers = #tpu.dot_dimension_numbers<[1], [0], [0], [1], [0, 0, 1, 1], [], []>} : vector<32x32xf32>, vector<32x256xf32>, vector<32x256xf32> -> vector<32x256xf32>
    %22 = vector.broadcast %5 : vector<32x1xf32> to vector<32x256xf32>
    %23 = arith.addf %21, %22 : vector<32x256xf32>
    %24 = math.tanh %23 : vector<32x256xf32>
    %cst_22 = arith.constant dense<0.000000e+00> : vector<32x256xf32>
    %25 = tpu.matmul %6, %24, %cst_22 {dimension_numbers = #tpu.dot_dimension_numbers<[1], [0], [0], [1], [0, 0, 1, 1], [], []>} : vector<32x32xf32>, vector<32x256xf32>, vector<32x256xf32> -> vector<32x256xf32>
    %26 = vector.broadcast %7 : vector<32x1xf32> to vector<32x256xf32>
    %27 = arith.addf %25, %26 : vector<32x256xf32>
    %28 = math.tanh %27 : vector<32x256xf32>
    %29 = vector.broadcast %8 : vector<32x1xf32> to vector<32x256xf32>
    %30 = arith.mulf %28, %29 : vector<32x256xf32>
    %cst_23 = arith.constant dense<0.000000e+00> : vector<256xf32>
    %31 = vector.multi_reduction <add>, %30, %cst_23 [0] : vector<32x256xf32> to vector<256xf32>
    %32 = vector.shape_cast %31 : vector<256xf32> to vector<1x256xf32>
    %33 = vector.broadcast %9 : vector<1x1xf32> to vector<1x256xf32>
    %34 = arith.addf %32, %33 : vector<1x256xf32>
    %cst_24 = arith.constant 5.000000e-01 : f32
    %35 = vector.broadcast %cst_24 : f32 to vector<1x256xf32>
    %36 = arith.mulf %35, %34 : vector<1x256xf32>
    %37 = math.tanh %36 : vector<1x256xf32>
    %cst_25 = arith.constant 1.000000e+00 : f32
    %38 = vector.broadcast %cst_25 : f32 to vector<1x256xf32>
    %39 = arith.addf %37, %38 : vector<1x256xf32>
    %cst_26 = arith.constant 5.000000e-01 : f32
    %40 = vector.broadcast %cst_26 : f32 to vector<1x256xf32>
    %41 = arith.mulf %40, %39 : vector<1x256xf32>
    %c0_27 = arith.constant 0 : index
    %c0_28 = arith.constant 0 : index
    %42 = vector.load %arg12[%c0_27, %c0_28] : memref<1x256xf32, #tpu.memory_space<vmem>>, vector<1x256xf32>
    tpu.vector_store %arg12[%c0_27, %c0_28], %41 {strides = array<i32>} : memref<1x256xf32, #tpu.memory_space<vmem>>, vector<1x256xf32>,
    return
  }
  func.func @transform_0(%arg0: i32) -> (i32, i32) {
    %c0_i32 = arith.constant 0 : i32
    %c0_i32_0 = arith.constant 0 : i32
    return %c0_i32, %arg0 : i32, i32
  }
  func.func @transform_1(%arg0: i32) -> (i32, i32) {
    %c0_i32 = arith.constant 0 : i32
    %c0_i32_0 = arith.constant 0 : i32
    %c0_i32_1 = arith.constant 0 : i32
    return %c0_i32, %c0_i32_0 : i32, i32
  }
  func.func @transform_2(%arg0: i32) -> (i32, i32) {
    %c0_i32 = arith.constant 0 : i32
    %c0_i32_0 = arith.constant 0 : i32
    %c0_i32_1 = arith.constant 0 : i32
    return %c0_i32, %c0_i32_0 : i32, i32
  }
  func.func @transform_3(%arg0: i32) -> (i32, i32) {
    %c0_i32 = arith.constant 0 : i32
    %c0_i32_0 = arith.constant 0 : i32
    %c0_i32_1 = arith.constant 0 : i32
    return %c0_i32, %c0_i32_0 : i32, i32
  }
  func.func @transform_4(%arg0: i32) -> (i32, i32) {
    %c0_i32 = arith.constant 0 : i32
    %c0_i32_0 = arith.constant 0 : i32
    %c0_i32_1 = arith.constant 0 : i32
    return %c0_i32, %c0_i32_0 : i32, i32
  }
  func.func @transform_5(%arg0: i32) -> (i32, i32) {
    %c0_i32 = arith.constant 0 : i32
    %c0_i32_0 = arith.constant 0 : i32
    %c0_i32_1 = arith.constant 0 : i32
    return %c0_i32, %c0_i32_0 : i32, i32
  }
  func.func @transform_6(%arg0: i32) -> (i32, i32) {
    %c0_i32 = arith.constant 0 : i32
    %c0_i32_0 = arith.constant 0 : i32
    %c0_i32_1 = arith.constant 0 : i32
    return %c0_i32, %c0_i32_0 : i32, i32
  }
  func.func @transform_7(%arg0: i32) -> (i32, i32) {
    %c0_i32 = arith.constant 0 : i32
    %c0_i32_0 = arith.constant 0 : i32
    %c0_i32_1 = arith.constant 0 : i32
    return %c0_i32, %c0_i32_0 : i32, i32
  }
  func.func @transform_8(%arg0: i32) -> (i32, i32) {
    %c0_i32 = arith.constant 0 : i32
    %c0_i32_0 = arith.constant 0 : i32
    %c0_i32_1 = arith.constant 0 : i32
    return %c0_i32, %c0_i32_0 : i32, i32
  }
  func.func @transform_9(%arg0: i32) -> (i32, i32) {
    %c0_i32 = arith.constant 0 : i32
    %c0_i32_0 = arith.constant 0 : i32
    %c0_i32_1 = arith.constant 0 : i32
    return %c0_i32, %c0_i32_0 : i32, i32
  }
  func.func @transform_10(%arg0: i32) -> (i32, i32) {
    %c0_i32 = arith.constant 0 : i32
    %c0_i32_0 = arith.constant 0 : i32
    %c0_i32_1 = arith.constant 0 : i32
    return %c0_i32, %c0_i32_0 : i32, i32
  }
  func.func @transform_11(%arg0: i32) -> (i32, i32) {
    %c0_i32 = arith.constant 0 : i32
    %c0_i32_0 = arith.constant 0 : i32
    return %c0_i32, %arg0 : i32, i32
  }
}

</mosaic_0001>

<bundles_post_ra>
// kernel: tpu_custom_call.1
= control target key start
LH: loop header
LB: loop body
LE: loop exit
PB: predicated region body
PF: predicated region fallthrough
CT: control target
= control target key end

     0   :  { %s1549_s0 = inlined_call_operand.vmem [shape: f32[1,512], index: 0, kind: input, shape index: {}]   ;;  %s1550_s1 = inlined_call_operand.vmem [shape: f32[32,1], index: 1, kind: input, shape index: {}]   ;;  %s1551_s2 = inlined_call_operand.vmem [shape: f32[32,1], index: 2, kind: input, shape index: {}]   ;;  %s1552_s3 = inlined_call_operand.vmem [shape: f32[32,32], index: 3, kind: input, shape index: {}]   ;;  %s1553_s4 = inlined_call_operand.vmem [shape: f32[32,1], index: 4, kind: input, shape index: {}]   ;;  %s1554_s5 = inlined_call_operand.vmem [shape: f32[32,32], index: 5, kind: input, shape index: {}]   ;;  %s1555_s6 = inlined_call_operand.vmem [shape: f32[32,1], index: 6, kind: input, shape index: {}]   ;;  %s1556_s7 = inlined_call_operand.vmem [shape: f32[32,32], index: 7, kind: input, shape index: {}]   ;;  %s1557_s8 = inlined_call_operand.vmem [shape: f32[32,1], index: 8, kind: input, shape index: {}]   ;;  %s1558_s9 = inlined_call_operand.vmem [shape: f32[32,1], index: 9, kind: input, shape index: {}]   ;;  %s1559_s10 = inlined_call_operand.<no memory space> [shape: f32[1,1], index: 10, kind: input, shape index: {}]   ;;  %s1560_s11 = inlined_call_operand.hbm [shape: f32[1,512], index: 11, kind: output, shape index: {}]  }
   0x1   :  { %1561 = sst [smem:[#allocation6_spill]] %s1549_s0  ;;  %v16_v0 = vstv %s1559_s10 }
   0x2   :  { %17 = vst [vmem:[#allocation2] sm:$0x1] %v16_v0 }
   0x3   :  { %18 = vsyncpa [#allocation4], 0 }
   0x4   :  { %20 = vsyncpa [#allocation4 + $0x1], 0  ;;  %s1320_s19 = smov 0   ;;  %s1322_s20 = smov 0  }
   0x5   :  { %s1324_s21 = smov 0   ;;  %s1326_s22 = smov 0  }
   0x6 LB: > { %s1341_s10 = sadd.s32 4294967295, %s1251_s22   ;;  %s1047_s23 = sadd.s32 4294967294, %s1251_s22   ;;  %s1251_s22 = sphi %s1326_s22, %s1568_s22   ;;  %s1247_s21 = sphi %s1324_s21, %s1567_s21   ;;  %s1243_s20 = sphi %s1322_s20, %s1566_s20   ;;  %s1239_s19 = sphi %s1320_s19, %s1565_s19  }
   0x7   : > { %s1345_s24 = sadd.s32 1, %s1251_s22   ;;  %s269_s25 = sadd.s32 1, %s1247_s21 }
   0x8   : > { %s266_s26 = ssub.s32 %s1251_s22, %s1345_s24  ;;  %p279_p0 = scmp.ne.s32.totalorder %s1247_s21, %s1243_s20 }
   0x9   : > { %p267_p1 = scmp.eq.s32.totalorder %s266_s26, 0  ;;  %p280_p2 = scmp.eq.s32.totalorder %s1341_s10, 1 }
   0xa   : > { %p285_p3 = scmp.ne.s32.totalorder %s1243_s20, %s1239_s19  ;;  %p286_p4 = scmp.eq.s32.totalorder %s1047_s23, 1 }
   0xb   : > { %s1356_s27 = scalar_select %p267_p1, %s1247_s21, %s269_s25  }
   0xc   : > { %p1358_p5 = por %p280_p2, %p279_p0  ;;  %p1362_p6 = por %p286_p4, %p285_p3 }
   0xd   : > { %p1050_p7 = scmp.ge.s32.totalorder %s1251_s22, 1  ;;  %p342_p8 = scmp.lt.s32.totalorder %s1251_s22, 3 }
   0xf   : > { %p343_p9 = pnand %p1050_p7, %p342_p8 }
  0x10   : > { %s1052_s15 = sshll.u32 (!%p343_p9), %s1341_s10, 1  ;;  %s1564_s0 = sld [smem:[#allocation6_spill]] (!%p343_p9) }
  0x11   : > { %346 = sbr.rel (%p343_p9) target bundleno = 915 (0x393), region = 64  ;;  %p382_p10 = scmp.lt.s32.totalorder (!%p343_p9), %s1052_s15, 3 }
  0x12   : > { %s378_s26 = sand.u32 (!%p343_p9), 1, %s1243_s20   ;;  %s1070_s12 = sshll.u32 (!%p343_p9), %s1341_s10, 5 }
  0x13   : > { %s1051_s30 = sshll.u32 (!%p343_p9), %s378_s26, 1  ;;  %s989_s17 = scalar_lea.hbm (!%p343_p9), %s1560_s11, %s1070_s12 }
  0x14   : > { %s380_s13 = scalar_lea.vmem (!%p343_p9), [#allocation3], %s1051_s30  ;;  %s1256_s25 = smov (!%p343_p9), [#allocation3]  }
  0x15   : > { %s991_s14 = sshll.u32 (!%p343_p9), %s380_s13, 4  ;;  %s1195_s10 = sshll.u32 (!%p343_p9), %s1256_s25, 4  ;;  %s992_s14 = int_to_ptr.vmem [resolvable:$true] %s991_s14  ;;  %s1196_s10 = int_to_ptr.vmem [resolvable:$false] %s1195_s10 }
  0x16   : > { %v394_v1 = vld [vmem:[%s1551_s2 + $0x18] sm:$0xff]  ;;  %v1253_v3 = vmov 0   ;;  %v389_v4 = vld [vmem:[%s1550_s1 + $0x10] sm:$0xff]  ;;  %v388_v5 = vld [vmem:[%s1550_s1 + $0x8] sm:$0xff]  ;;  %v1254_v20 = vmov 0.0   ;;  %v446_v28 = vlaneseq  ;;  %s1570_s15 = smov (!%p382_p10, %s1052_s15), 3  ;;  %p1198_p0 = scmp.lt.s32.totalorder %s992_s14, %s1196_s10 }
  0x17   : > { %v390_v2 = vld [vmem:[%s1550_s1 + $0x18] sm:$0xff]  ;;  %1122 = vset.pattern.permute.xlu1 %v1253_v3  ;;  %1121 = vset.pattern.permute.xlu0 %v1253_v3  ;;  %v393_v6 = vld [vmem:[%s1551_s2 + $0x10] sm:$0xff]  ;;  %v387_v7 = vld [vmem:[%s1550_s1] sm:$0xff]  ;;  %s384_s18 = scalar_lea.vmem %s1564_s0, %s1570_s15  ;;  %vm520_vm0 = vcmask 261120   ;;  %s1191_s23 = scalar_lea.vmem %s992_s14, 32 }
  0x18   : > { %481 = vperm.xlu1 %1122, %v394_v1   ;;  %442 = vperm.xlu0 %1121, %v390_v2   ;;  %v392_v8 = vld [vmem:[%s1551_s2 + $0x8] sm:$0xff]  ;;  %v391_v9 = vld [vmem:[%s1551_s2] sm:$0xff]  ;;  %v402_v10 = vld [vmem:[%s1553_s4 + $0x18] sm:$0xff]  ;;  %v1444_v29 = vshrl.u32 %v446_v28, 7  ;;  %vm973_vm1 = vcmp.lt.s32.totalorder %v446_v28, 256  ;;  %p1192_p11 = scmp.ne.s32.totalorder %s992_s14, %s1191_s23  ;;  %s1197_s30 = scalar_lea.vmem %s1196_s10, 64 }
  0x19   : > { %v401_v11 = vld [vmem:[%s1553_s4 + $0x10] sm:$0xff]  ;;  %v400_v12 = vld [vmem:[%s1553_s4 + $0x8] sm:$0xff]  ;;  %v399_v13 = vld [vmem:[%s1553_s4] sm:$0xff]  ;;  %597 = vmatprep.mubr.f32.mxu0 %v1254_v20  ;;  %609 = vmatprep.mubr.f32.mxu1 %v1254_v20  ;;  %p1199_p1 = scmp.lt.s32.totalorder %s1197_s30, %s1191_s23 }
  0x1a   : > { %v410_v14 = vld [vmem:[%s1555_s6 + $0x18] sm:$0xff]  ;;  %v409_v15 = vld [vmem:[%s1555_s6 + $0x10] sm:$0xff]  ;;  %v408_v16 = vld [vmem:[%s1555_s6 + $0x8] sm:$0xff]  ;;  %v448_v30 = vsub.s32 0, %v1444_v29  ;;  %v452_v31 = vsub.s32 1, %v1444_v29  ;;  %p1193_p12 = pnand %p1192_p11, %p1358_p5 }
  0x1b   : > { %v407_v17 = vld [vmem:[%s1555_s6] sm:$0xff]  ;;  %v416_v19 = vld [vmem:[%s1557_s8 + $0x8] sm:$0xff]  ;;  %v417_v21 = vld [vmem:[%s1557_s8 + $0x10] sm:$0xff]  ;;  %p1200_p2 = por %p1199_p1, %p1198_p0 }
  0x1c   : > { %437 = vperm.xlu0 %1121, %v389_v4   ;;  %432 = vperm.xlu1 %1122, %v388_v5   ;;  %v415_v18 = vld [vmem:[%s1557_s8] sm:$0xff]  ;;  %v418_v22 = vld [vmem:[%s1557_s8 + $0x18] sm:$0xff]  ;;  %v420_v24 = vld [vmem:[%s1558_s9 + $0x8] sm:$0xff]  ;;  %p1194_p13 = pneg %p1193_p12 }
  0x1d   : > { %v419_v23 = vld [vmem:[%s1558_s9] sm:$0xff]  ;;  %v421_v25 = vld [vmem:[%s1558_s9 + $0x10] sm:$0xff]  ;;  %v422_v26 = vld [vmem:[%s1558_s9 + $0x18] sm:$0xff] }
  0x1e   : > { %v423_v27 = vld [vmem:[#allocation2] sm:$0x1]  ;;  %v397_v3 = vld [vmem:[%s1552_s3 + $0x10] sm:$0xff]  ;;  %v396_v5 = vld [vmem:[%s1552_s3 + $0x8] sm:$0xff]  ;;  %p1201_p3 = pnand %p1200_p2, %p1194_p13 }
  0x1f   : > { %v424_v32 = vld [vmem:[%s384_s18] sm:$0x3]  ;;  %s977_s18 = scalar_lea.sflag [#allocation4], %s378_s26 }
  0x20   : > { %476 = vperm.xlu0 %1121, %v393_v6   ;;  %427 = vperm.xlu1 %1122, %v387_v7   ;;  %v449_v33 = vrot.slane %v424_v32, %v448_v30  ;;  %v453_v34 = vrot.slane %v424_v32, %v452_v31  ;;  %v395_v2 = vld [vmem:[%s1552_s3] sm:$0xff]  ;;  %v398_v6 = vld [vmem:[%s1552_s3 + $0x18] sm:$0xff] }
  0x24   : > { %471 = vperm.xlu0 %1121, %v392_v8   ;;  %466 = vperm.xlu1 %1122, %v391_v9  }
  0x28   : > { %517 = vperm.xlu0 %1121, %v402_v10   ;;  %512 = vperm.xlu1 %1122, %v401_v11  }
  0x2c   : > { %507 = vperm.xlu0 %1121, %v400_v12   ;;  %502 = vperm.xlu1 %1122, %v399_v13  }
  0x30   : > { %647 = vperm.xlu0 %1121, %v410_v14   ;;  %642 = vperm.xlu1 %1122, %v409_v15  }
  0x34   : > { %637 = vperm.xlu0 %1121, %v408_v16   ;;  %632 = vperm.xlu1 %1122, %v407_v17  }
  0x38   : > { %761 = vperm.xlu0 %1121, %v415_v18   ;;  %766 = vperm.xlu1 %1122, %v416_v19  }
  0x3c   : > { %771 = vperm.xlu0 %1121, %v417_v21   ;;  %776 = vperm.xlu1 %1122, %v418_v22  }
  0x40   : > { %890 = vperm.xlu0 %1121, %v419_v23   ;;  %895 = vperm.xlu1 %1122, %v420_v24  }
  0x44   : > { %900 = vperm.xlu0 %1121, %v421_v25   ;;  %905 = vperm.xlu1 %1122, %v422_v26  }
  0x48   : > { %936 = vperm.xlu0 %1121, %v423_v27  }
  0x93   : > { %v482_v35 = vpop.permute.xlu1 %481  ;;  %v443_v36 = vpop.permute.xlu0 %442 }
  0x94   : > { %v462_v37 = vmul.f32 %v449_v33, %v443_v36  ;;  %v463_v38 = vmul.f32 %v453_v34, %v443_v36 }
  0x96   : > { %v490_v39 = vadd.f32 %v482_v35, %v462_v37  ;;  %v491_v40 = vadd.f32 %v482_v35, %v463_v38  ;;  %v403_v38 = vld [vmem:[%s1554_s5] sm:$0xff] }
  0x97   : > { %v438_v41 = vpop.permute.xlu0 %437  ;;  %v433_v42 = vpop.permute.xlu1 %432 }
  0x98   : > { %1123 = vtanh.f32 %v490_v39  ;;  %v460_v43 = vmul.f32 %v449_v33, %v438_v41  ;;  %v461_v44 = vmul.f32 %v453_v34, %v438_v41  ;;  %v458_v49 = vmul.f32 %v449_v33, %v433_v42  ;;  %v405_v41 = vld [vmem:[%s1554_s5 + $0x10] sm:$0xff] }
  0x99   : > { %1125 = vtanh.f32 %v491_v40  ;;  %v459_v50 = vmul.f32 %v453_v34, %v433_v42  ;;  %v404_v40 = vld [vmem:[%s1554_s5 + $0x8] sm:$0xff]  ;;  %v406_v42 = vld [vmem:[%s1554_s5 + $0x18] sm:$0xff] }
  0x9b   : > { %v477_v45 = vpop.permute.xlu0 %476  ;;  %v428_v46 = vpop.permute.xlu1 %427 }
  0x9c   : > { %v488_v47 = vadd.f32 %v477_v45, %v460_v43  ;;  %v489_v48 = vadd.f32 %v477_v45, %v461_v44  ;;  %v457_v51 = vmul.f32 %v453_v34, %v428_v46  ;;  %v456_v54 = vmul.f32 %v449_v33, %v428_v46 }
  0x9e   : > { %1127 = vtanh.f32 %v488_v47 }
  0x9f   : > { %1129 = vtanh.f32 %v489_v48  ;;  %v472_v52 = vpop.permute.xlu0 %471  ;;  %v467_v53 = vpop.permute.xlu1 %466 }
  0xa0   : > { %v486_v55 = vadd.f32 %v472_v52, %v458_v49  ;;  %v487_v56 = vadd.f32 %v472_v52, %v459_v50  ;;  %v485_v57 = vadd.f32 %v467_v53, %v457_v51  ;;  %v484_v58 = vadd.f32 %v467_v53, %v456_v54 }
  0xa2   : > { %1131 = vtanh.f32 %v486_v55 }
  0xa3   : > { %1133 = vtanh.f32 %v487_v56  ;;  %v518_v11 = vpop.permute.xlu0 %517  ;;  %v513_v14 = vpop.permute.xlu1 %512 }
  0xa4   : > { %1135 = vtanh.f32 %v485_v57 }
  0xa5   : > { %v1124_v59 = vpop.eup %1123  ;;  %1137 = vtanh.f32 %v484_v58 }
  0xa6   : > { %v1126_v60 = vpop.eup %1125 }
  0xa7   : > { %557 = vmatprep.subr.mxu0 %v1126_v60  ;;  %1071 = vmatprep.subr.mxu1 %v1126_v60  ;;  %v508_v21 = vpop.permute.xlu0 %507  ;;  %v503_v24 = vpop.permute.xlu1 %502 }
  0xa8   : > { %558 = vmatpush1.msra.mxu0 %v1124_v59  ;;  %1075 = vmatpush1.msra.mxu1 %v1124_v59 }
  0xab   : > { %v1128_v61 = vpop.eup %1127  ;;  %v648_v48 = vpop.permute.xlu0 %647 }
  0xac   : > { %v1130_v62 = vpop.eup %1129  ;;  %v643_v50 = vpop.permute.xlu1 %642 }
  0xad   : > { %559 = vmatprep.subr.mxu0 %v1130_v62  ;;  %1072 = vmatprep.subr.mxu1 %v1130_v62 }
  0xae   : > { %560 = vmatpush1.msra.mxu0 %v1128_v61  ;;  %1076 = vmatpush1.msra.mxu1 %v1128_v61 }
  0xaf   : > { %v1132_v63 = vpop.eup %1131  ;;  %v638_v56 = vpop.permute.xlu0 %637 }
  0xb0   : > { %v1134_v0 = vpop.eup %1133  ;;  %v633_v59 = vpop.permute.xlu1 %632 }
  0xb1   : > { %561 = vmatprep.subr.mxu0 %v1134_v0  ;;  %1073 = vmatprep.subr.mxu1 %v1134_v0  ;;  %v1136_v1 = vpop.eup %1135 }
  0xb2   : > { %562 = vmatpush1.msra.mxu0 %v1132_v63  ;;  %1077 = vmatpush1.msra.mxu1 %v1132_v63  ;;  %v1138_v4 = vpop.eup %1137 }
  0xb3   : > { %563 = vmatprep.subr.mxu0 %v1136_v1  ;;  %1074 = vmatprep.subr.mxu1 %v1136_v1 }
  0xb4   : > { %564 = vmatpush1.msra.mxu0 %v1138_v4  ;;  %1078 = vmatpush1.msra.mxu1 %v1138_v4 }
  0xb5   : > { %1053 = vmatmul.mubr.msk.f32.vlgmr.msra.gmra.mxu0 %vm520_vm0, %v395_v2  ;;  %1055 = vmatmul.mubr.msk.f32.vlgmr.msra.gmra.mxu1 %vm520_vm0, %v397_v3 }
  0xb6   : > { %603 = vmatprep.mubr.f32.mxu0 %v1254_v20  ;;  %615 = vmatprep.mubr.f32.mxu1 %v1254_v20 }
  0xb9   : > { %1054 = vmatmul.mubr.msk.f32.gmra.mxu0 %vm520_vm0, %v396_v5  ;;  %1056 = vmatmul.mubr.msk.f32.gmra.mxu1 %vm520_vm0, %v398_v6  ;;  %v411_v6 = vld [vmem:[%s1556_s7] sm:$0xff] }
  0xba   : > { %726 = vmatprep.mubr.f32.mxu1 %v1254_v20  ;;  %855 = vmatprep.mubr.f32.mxu0 %v1254_v20 }
 0x175   : > { %v599_v7 = vpop.f32.mrf.mxu0  ;;  %v611_v8 = vpop.f32.mrf.mxu1 }
 0x176   : > { %v612_v22 = vadd.f32 %v611_v8, %v513_v14  ;;  %v600_v27 = vadd.f32 %v599_v7, %v503_v24  ;;  %v412_v8 = vld [vmem:[%s1556_s7 + $0x8] sm:$0xff] }
 0x177   : > { %v601_v9 = vpop.f32.mrf.mxu0  ;;  %v613_v10 = vpop.f32.mrf.mxu1 }
 0x178   : > { %v614_v19 = vadd.f32 %v613_v10, %v513_v14  ;;  %v602_v26 = vadd.f32 %v601_v9, %v503_v24  ;;  %v413_v9 = vld [vmem:[%s1556_s7 + $0x10] sm:$0xff]  ;;  %v414_v10 = vld [vmem:[%s1556_s7 + $0x18] sm:$0xff]  ;;  %v767_v14 = vpop.permute.xlu1 %766 }
 0x179   : > { %v605_v12 = vpop.f32.mrf.mxu0  ;;  %v617_v13 = vpop.f32.mrf.mxu1 }
 0x17a   : > { %v618_v16 = vadd.f32 %v617_v13, %v518_v11  ;;  %v606_v25 = vadd.f32 %v605_v12, %v508_v21  ;;  %v762_v12 = vpop.permute.xlu0 %761 }
 0x17b   : > { %v619_v15 = vpop.f32.mrf.mxu1  ;;  %v607_v17 = vpop.f32.mrf.mxu0 }
 0x17c   : > { %v620_v18 = vadd.f32 %v619_v15, %v518_v11  ;;  %v608_v23 = vadd.f32 %v607_v17, %v508_v21 }
 0x17e   : > { %1139 = vtanh.f32 %v620_v18 }
 0x17f   : > { %1141 = vtanh.f32 %v618_v16 }
 0x180   : > { %1143 = vtanh.f32 %v614_v19 }
 0x181   : > { %1145 = vtanh.f32 %v612_v22  ;;  %v772_v22 = vpop.permute.xlu0 %771 }
 0x182   : > { %1147 = vtanh.f32 %v608_v23 }
 0x183   : > { %1149 = vtanh.f32 %v606_v25 }
 0x184   : > { %1151 = vtanh.f32 %v602_v26  ;;  %v777_v26 = vpop.permute.xlu1 %776 }
 0x185   : > { %1153 = vtanh.f32 %v600_v27 }
 0x18b   : > { %v1140_v31 = vpop.eup %1139 }
 0x18c   : > { %v1142_v32 = vpop.eup %1141  ;;  %686 = vmatprep.subr.mxu1 %v1140_v31 }
 0x18d   : > { %v1144_v33 = vpop.eup %1143  ;;  %687 = vmatpush1.msra.mxu1 %v1142_v32 }
 0x18e   : > { %v1146_v34 = vpop.eup %1145  ;;  %688 = vmatprep.subr.mxu1 %v1144_v33 }
 0x18f   : > { %v1148_v35 = vpop.eup %1147  ;;  %689 = vmatpush1.msra.mxu1 %v1146_v34  ;;  %v891_v34 = vpop.permute.xlu0 %890 }
 0x190   : > { %v1150_v36 = vpop.eup %1149  ;;  %690 = vmatprep.subr.mxu1 %v1148_v35 }
 0x191   : > { %v1152_v37 = vpop.eup %1151  ;;  %691 = vmatpush1.msra.mxu1 %v1150_v36 }
 0x192   : > { %v1154_v39 = vpop.eup %1153  ;;  %692 = vmatprep.subr.mxu1 %v1152_v37 }
 0x193   : > { %693 = vmatpush1.msra.mxu1 %v1154_v39 }
 0x194   : > { %1057 = vmatmul.mubr.msk.f32.vlgmr.msra.gmra.mxu1 %vm520_vm0, %v403_v38  ;;  %v896_v38 = vpop.permute.xlu1 %895 }
 0x195   : > { %732 = vmatprep.mubr.f32.mxu1 %v1254_v20 }
 0x198   : > { %1058 = vmatmul.mubr.msk.f32.gmra.mxu1 %vm520_vm0, %v404_v40 }
 0x199   : > { %738 = vmatprep.mubr.f32.mxu1 %v1254_v20 }
 0x19c   : > { %1059 = vmatmul.mubr.msk.f32.gmra.mxu1 %vm520_vm0, %v405_v41 }
 0x19d   : > { %744 = vmatprep.mubr.f32.mxu1 %v1254_v20 }
 0x1a0   : > { %1060 = vmatmul.mubr.msk.f32.gmra.mxu1 %vm520_vm0, %v406_v42  ;;  %v901_v42 = vpop.permute.xlu0 %900 }
 0x254   : > { %v728_v43 = vpop.f32.mrf.mxu1 }
 0x255   : > { %v729_v62 = vadd.f32 %v728_v43, %v633_v59 }
 0x256   : > { %v730_v44 = vpop.f32.mrf.mxu1 }
 0x257   : > { %v731_v61 = vadd.f32 %v730_v44, %v633_v59 }
 0x258   : > { %v734_v45 = vpop.f32.mrf.mxu1 }
 0x259   : > { %v735_v60 = vadd.f32 %v734_v45, %v638_v56 }
 0x25a   : > { %v736_v46 = vpop.f32.mrf.mxu1 }
 0x25b   : > { %v737_v58 = vadd.f32 %v736_v46, %v638_v56 }
 0x25c   : > { %v740_v47 = vpop.f32.mrf.mxu1 }
 0x25d   : > { %v741_v57 = vadd.f32 %v740_v47, %v643_v50 }
 0x25e   : > { %v742_v49 = vpop.f32.mrf.mxu1 }
 0x25f   : > { %v743_v54 = vadd.f32 %v742_v49, %v643_v50 }
 0x260   : > { %v746_v51 = vpop.f32.mrf.mxu1 }
 0x261   : > { %v747_v52 = vadd.f32 %v746_v51, %v648_v48  ;;  %v906_v51 = vpop.permute.xlu1 %905 }
 0x262   : > { %v748_v53 = vpop.f32.mrf.mxu1 }
 0x263   : > { %v749_v55 = vadd.f32 %v748_v53, %v648_v48 }
 0x265   : > { %1155 = vtanh.f32 %v749_v55 }
 0x266   : > { %1157 = vtanh.f32 %v747_v52 }
 0x267   : > { %1159 = vtanh.f32 %v743_v54 }
 0x268   : > { %1161 = vtanh.f32 %v741_v57 }
 0x269   : > { %1163 = vtanh.f32 %v737_v58 }
 0x26a   : > { %1165 = vtanh.f32 %v735_v60 }
 0x26b   : > { %1167 = vtanh.f32 %v731_v61 }
 0x26c   : > { %1169 = vtanh.f32 %v729_v62 }
 0x272   : > { %v1156_v63 = vpop.eup %1155 }
 0x273   : > { %v1158_v0 = vpop.eup %1157  ;;  %815 = vmatprep.subr.mxu0 %v1156_v63 }
 0x274   : > { %v1160_v1 = vpop.eup %1159  ;;  %816 = vmatpush1.msra.mxu0 %v1158_v0 }
 0x275   : > { %v1162_v2 = vpop.eup %1161  ;;  %817 = vmatprep.subr.mxu0 %v1160_v1 }
 0x276   : > { %v1164_v3 = vpop.eup %1163  ;;  %818 = vmatpush1.msra.mxu0 %v1162_v2 }
 0x277   : > { %v1166_v4 = vpop.eup %1165  ;;  %819 = vmatprep.subr.mxu0 %v1164_v3  ;;  %v937_v3 = vpop.permute.xlu0 %936 }
 0x278   : > { %v1168_v5 = vpop.eup %1167  ;;  %820 = vmatpush1.msra.mxu0 %v1166_v4 }
 0x279   : > { %v1170_v7 = vpop.eup %1169  ;;  %821 = vmatprep.subr.mxu0 %v1168_v5 }
 0x27a   : > { %822 = vmatpush1.msra.mxu0 %v1170_v7 }
 0x27b   : > { %1061 = vmatmul.mubr.msk.f32.vlgmr.msra.gmra.mxu0 %vm520_vm0, %v411_v6  ;;  %v942_v6 = vrot.slane %v937_v3, %v448_v30 }
 0x27c   : > { %861 = vmatprep.mubr.f32.mxu0 %v1254_v20 }
 0x27f   : > { %1062 = vmatmul.mubr.msk.f32.gmra.mxu0 %vm520_vm0, %v412_v8 }
 0x280   : > { %867 = vmatprep.mubr.f32.mxu0 %v1254_v20 }
 0x283   : > { %1063 = vmatmul.mubr.msk.f32.gmra.mxu0 %vm520_vm0, %v413_v9 }
 0x284   : > { %873 = vmatprep.mubr.f32.mxu0 %v1254_v20 }
 0x287   : > { %1064 = vmatmul.mubr.msk.f32.gmra.mxu0 %vm520_vm0, %v414_v10 }
 0x33b   : > { %v857_v11 = vpop.f32.mrf.mxu0 }
 0x33c   : > { %v858_v15 = vadd.f32 %v857_v11, %v762_v12 }
 0x33d   : > { %v859_v13 = vpop.f32.mrf.mxu0 }
 0x33e   : > { %v860_v18 = vadd.f32 %v859_v13, %v762_v12 }
 0x33f   : > { %v863_v16 = vpop.f32.mrf.mxu0 }
 0x340   : > { %v864_v17 = vadd.f32 %v863_v16, %v767_v14 }
 0x341   : > { %v865_v19 = vpop.f32.mrf.mxu0 }
 0x342   : > { %1171 = vtanh.f32 %v864_v17  ;;  %v866_v21 = vadd.f32 %v865_v19, %v767_v14  ;;  %v1255_v14 = vmov 1966171168  }
 0x343   : > { %1173 = vtanh.f32 %v858_v15  ;;  %v869_v20 = vpop.f32.mrf.mxu0  ;;  %v957_v15 = vunpack.c.l.s4 %v1255_v14 }
 0x344   : > { %1175 = vtanh.f32 %v866_v21  ;;  %v870_v23 = vadd.f32 %v869_v20, %v772_v22 }
 0x345   : > { %1177 = vtanh.f32 %v860_v18  ;;  %v871_v24 = vpop.f32.mrf.mxu0  ;;  %v958_v18 = vunpack.c.0.s8 %v957_v15 }
 0x346   : > { %1179 = vtanh.f32 %v870_v23  ;;  %v872_v25 = vadd.f32 %v871_v24, %v772_v22 }
 0x347   : > { %v875_v27 = vpop.f32.mrf.mxu0  ;;  %v961_v20 = vsub.s32 %v958_v18, %v1444_v29 }
 0x348   : > { %1181 = vtanh.f32 %v872_v25  ;;  %v876_v31 = vadd.f32 %v875_v27, %v777_v26 }
 0x349   : > { %v877_v32 = vpop.f32.mrf.mxu0 }
 0x34a   : > { %1183 = vtanh.f32 %v876_v31  ;;  %v878_v33 = vadd.f32 %v877_v32, %v777_v26 }
 0x34c   : > { %1185 = vtanh.f32 %v878_v33 }
 0x34f   : > { %v1172_v35 = vpop.eup %1171 }
 0x350   : > { %v1174_v36 = vpop.eup %1173  ;;  %v910_v40 = vmul.f32 %v1172_v35, %v896_v38 }
 0x351   : > { %v1176_v37 = vpop.eup %1175  ;;  %v908_v43 = vmul.f32 %v1174_v36, %v891_v34 }
 0x352   : > { %v1178_v39 = vpop.eup %1177  ;;  %v911_v44 = vmul.f32 %v1176_v37, %v896_v38 }
 0x353   : > { %v1180_v41 = vpop.eup %1179  ;;  %v909_v47 = vmul.f32 %v1178_v39, %v891_v34  ;;  %v916_v48 = vadd.f32 %v910_v40, %v908_v43 }
 0x354   : > { %v912_v45 = vmul.f32 %v1180_v41, %v901_v42 }
 0x355   : > { %v1182_v46 = vpop.eup %1181  ;;  %v925_v52 = vadd.f32 %v911_v44, %v909_v47 }
 0x356   : > { %v913_v49 = vmul.f32 %v1182_v46, %v901_v42  ;;  %v917_v53 = vadd.f32 %v916_v48, %v912_v45 }
 0x357   : > { %v1184_v50 = vpop.eup %1183 }
 0x358   : > { %v914_v54 = vmul.f32 %v1184_v50, %v906_v51  ;;  %v926_v56 = vadd.f32 %v925_v52, %v913_v49 }
 0x359   : > { %v1186_v55 = vpop.eup %1185 }
 0x35a   : > { %v918_v57 = vadd.f32 %v917_v53, %v914_v54  ;;  %v915_v58 = vmul.f32 %v1186_v55, %v906_v51 }
 0x35c   : > { %v919_v59 = vrot.slane %v918_v57, 4  ;;  %v927_v60 = vadd.f32 %v926_v56, %v915_v58 }
 0x35e   : > { %v920_v61 = vadd.f32 %v919_v59, %v918_v57  ;;  %v928_v62 = vrot.slane %v927_v60, 4 }
 0x360   : > { %v921_v63 = vrot.slane %v920_v61, 2  ;;  %v929_v0 = vadd.f32 %v928_v62, %v927_v60 }
 0x362   : > { %v922_v1 = vadd.f32 %v921_v63, %v920_v61  ;;  %v930_v2 = vrot.slane %v929_v0, 2 }
 0x364   : > { %v931_v4 = vadd.f32 %v930_v2, %v929_v0  ;;  %v923_v5 = vrot.slane %v922_v1, 1 }
 0x366   : > { %v924_v7 = vadd.f32 %v923_v5, %v922_v1  ;;  %v932_v8 = vrot.slane %v931_v4, 1 }
 0x368   : > { %v933_v9 = vadd.f32 %v932_v8, %v931_v4  ;;  %v943_v10 = vadd.f32 %v942_v6, %v924_v7 }
 0x36a   : > { %v944_v11 = vadd.f32 %v942_v6, %v933_v9  ;;  %v945_v12 = vmul.f32 0.5, %v943_v10 }
 0x36c   : > { %v946_v13 = vmul.f32 0.5, %v944_v11  ;;  %1187 = vtanh.f32 %v945_v12 }
 0x36e   : > { %1189 = vtanh.f32 %v946_v13 }
 0x379   : > { %v1188_v16 = vpop.eup %1187 }
 0x37a   : > { %v949_v17 = vadd.f32 1.0, %v1188_v16 }
 0x37b   : > { %v1190_v19 = vpop.eup %1189 }
 0x37c   : > { %v950_v21 = vadd.f32 1.0, %v1190_v19  ;;  %v951_v30 = vmul.f32 0.5, %v949_v17 }
 0x37e   : > { %v952_v22 = vmul.f32 0.5, %v950_v21 }
 0x380   : > { %v955_v23 = vcombine.low %v951_v30, %v952_v22 }
 0x382   : > { %v962_v24 = vrot.slane %v955_v23, %v961_v20 }
 0x384   : > { %v969_v25 = vrot.slane %v962_v24, %v961_v20 }
 0x386   : > { %975 = vst.msk [vmem:[%s380_s13] sm:$0x3] %vm973_vm1, %v969_v25 }
 0x387   : > { %1204 = shalt.err (!%p1201_p3)
}
 0x388   : > { %s1205_s0 = scalar_lea.hbm %s989_s17, 32  ;;  %s1209_s13 = scalar_lea.hbm %s1560_s11, 64 }
 0x389   : > { %p1206_p4 = scmp.ne.s32.totalorder %s989_s17, %s1205_s0  ;;  %p1210_p9 = scmp.lt.s32.totalorder %s989_s17, %s1560_s11 }
 0x38a   : > { %p1211_p10 = scmp.lt.s32.totalorder %s1209_s13, %s1205_s0 }
 0x38b   : > { %p1207_p7 = pnand %p1206_p4, %p1358_p5 }
 0x38c   : > { %p1212_p11 = por %p1211_p10, %p1210_p9 }
 0x38d   : > { %p1208_p8 = pneg %p1207_p7 }
 0x38f   : > { %p1213_p12 = pnand %p1212_p11, %p1208_p8 }
 0x391   : > { %1216 = shalt.err (!%p1213_p12)
}
 0x392   : > { %1079 = dma.vmem_to_hbm [thread:$0]  (%p1358_p5), %s992_s14, 32, %s989_s17, %s977_s18  }
 0x393 PF: > { %p1085_p13 = scmp.ge.s32.totalorder %s1251_s22, 2  ;;  %s1003_s23 = sand.u32 1, %s1239_s19  }
 0x394   : > { %s1004_s25 = scalar_lea.sflag [#allocation4], %s1003_s23 }
 0x395   : > { %p1082_p0 = pnand %p1085_p13, %p1362_p6 }
 0x397   : > { %p1083_p1 = pneg %p1082_p0 }
 0x399   : > { %1234 = dma.done.wait (%p1083_p1), %s1004_s25, 32  }
 0x39a   : > { %1236 = vsyncadd (%p1083_p1), %s1004_s25, 4294967264  ;;  %p23_p2 = scmp.ge.s32.totalorder %s1345_s24, 4   ;;  %s1565_s19 = smov %s1243_s20 }
 0x39b   : > { %s1566_s20 = smov %s1247_s21  ;;  %s1567_s21 = smov %s1356_s27 }
 0x39c   : > { %s1568_s22 = smov %s1345_s24  ;;  %25 = sbr.rel (!%p23_p2) target bundleno = 6 (0x6), region = 99 }
 0x3a1   :  { %1009 = vsyncpa [#allocation4], 1 }
 0x3a2   :  { %1011 = vsyncpa [#allocation4 + $0x1], 1 }

</bundles_post_ra>
